<compile_context>
chip_gen: v6e
topology: v6e:2x2x1
jax: 0.10.0
libtpu: 0.0.40
codegen_flags: <defaults>
</compile_context>

<pallas_src>
import jax
import jax.numpy as jnp
from jax.experimental import pallas as pl
from jax.experimental.pallas import tpu as pltpu


# ----------------------------- Pallas kernel --------------------------------

def _make_generator_kernel(inv_tau):
    def kernel(z_ref, wl_ref, bl_ref, m1_ref, c1_ref, m2_ref, c2_ref,
               t_ref, tb_ref, grp_ref, grpt_ref, gum_ref, o_ref):
        bf16 = jnp.bfloat16
        f32 = jnp.float32

        # fc_block: Linear + ReLU  (its BatchNorm is folded into the next map)
        h = jnp.dot(z_ref[...], wl_ref[...], preferred_element_type=f32) + bl_ref[...]
        h = jnp.maximum(h, 0.0)
        # BN1 -> ConvTranspose1d #1 (+bias) as one dense matmul, then ReLU
        h = jnp.dot(h.astype(bf16), m1_ref[...], preferred_element_type=f32) + c1_ref[...]
        h = jnp.maximum(h, 0.0)
        # BN2 -> ConvTranspose1d #2 (+bias) as one dense matmul, then ReLU
        h = jnp.dot(h.astype(bf16), m2_ref[...], preferred_element_type=f32) + c2_ref[...]
        h = jnp.maximum(h, 0.0)
        # BN3 -> fc1 (+bias) + final transpose, flat lane-dense (bt, seq_len*n_chars)
        logits = jnp.dot(h.astype(bf16), t_ref[...], preferred_element_type=f32) + tb_ref[...]

        # Grouped gumbel-softmax over every n_chars-wide lane group (one group per
        # sequence position), fully lane-dense:
        #   - shift by the row max (softmax is shift-invariant within each group; fine
        #     here because logit spreads are far below the f32 exp underflow range),
        #   - per-group denominators via MXU matmuls against 0/1 grouping maps,
        #   - EUP approximate reciprocal instead of a VALU divide.
        g = (logits + gum_ref[...]) * inv_tau
        g = g - jnp.max(g, axis=-1, keepdims=True)
        e = jnp.exp(g)
        denom_grp = jnp.dot(e, grp_ref[...], preferred_element_type=f32)       # (bt, S)
        denom = jnp.dot(denom_grp, grpt_ref[...], preferred_element_type=f32)  # (bt, S*C)
        o_ref[...] = e * pl.reciprocal(denom, approx=True)

    return kernel


# ----------------------------- wrapper-side folding ---------------------------

def _convt_dense(w, stride, padding, l_in, l_out):
    """Dense matrix of ConvTranspose1d mapping flat (C_in*L_in) -> flat (C_out*L_out).

    w: (C_in, C_out, K), PyTorch ConvTranspose1d layout. Flat index order is row-major
    (channel, position), matching torch's .view / flatten.
    out[co*l_out + j] += x[ci*l_in + i] * w[ci, co, t]  where  j = i*stride + t - padding.
    """
    c_in, c_out, k = w.shape
    i = jnp.arange(l_in)[:, None]        # (l_in, 1)
    j = jnp.arange(l_out)[None, :]       # (1, l_out)
    t = j + padding - i * stride         # (l_in, l_out)
    valid = (t >= 0) & (t < k)
    tc = jnp.clip(t, 0, k - 1)
    wg = w[:, :, tc]                     # (C_in, C_out, l_in, l_out)
    wg = wg * valid[None, None].astype(w.dtype)
    return jnp.transpose(wg, (0, 2, 1, 3)).reshape(c_in * l_in, c_out * l_out)


def fold_generator_params(params, *, hidden, stride, kernel_size, seq_len, n_chars,
                          eps=1e-5):
    """One-time (hoisted) folding of all linear pieces into lane-dense matmul operands.

    Returns bf16 matmul weights, f32 bias rows and f32 softmax grouping maps, ready to be
    passed to generator_forward(). Call this once at parameter-preparation time.
    """
    (wl, bl, g1, be1, rm1, rv1,
     w1, b1, g2, be2, rm2, rv2,
     w2, b2, g3, be3, rm3, rv3,
     wfc1, bfc1) = params

    f32, bf16 = jnp.float32, jnp.bfloat16
    l0 = hidden // stride ** 2
    f0 = n_chars * stride ** 2
    f1 = f0 // stride
    pad = 2
    len1 = (l0 - 1) * stride - 2 * pad + kernel_size
    len2 = (len1 - 1) * stride - 2 * pad + kernel_size
    assert len2 == hidden and f1 // stride == n_chars
    assert hidden * n_chars == f0 * l0

    # ---- eval-mode BatchNorm folded to per-(flat)feature scale/shift ----
    # TODO(synk): BatchNorm1d is applied in inference form (running stats); train-mode
    # batch statistics are not computed inside the kernel.
    s0 = g1 / jnp.sqrt(rv1 + eps)
    t0 = be1 - rm1 * s0                                          # (hidden*n_chars,)
    s1c = g2 / jnp.sqrt(rv2 + eps)
    s1 = jnp.repeat(s1c, len1)
    t1 = jnp.repeat(be2 - rm2 * s1c, len1)                       # (f1*len1,)
    s2c = g3 / jnp.sqrt(rv3 + eps)
    s2 = jnp.repeat(s2c, hidden)
    t2 = jnp.repeat(be3 - rm3 * s2c, hidden)                     # (n_chars*hidden,)

    # ---- exact dense matrices for the two transposed convolutions ----
    # TODO(synk): at full ProteoGAN shapes these banded maps must be tiled with a grid
    # over output length (skipping zero bands); dense form is for small shapes only.
    m1 = _convt_dense(w1, stride, pad, l0, len1)                 # (f0*l0,    f1*len1)
    m2 = _convt_dense(w2, stride, pad, len1, hidden)             # (f1*len1,  n_chars*hidden)
    c1 = jnp.repeat(b1, len1)
    c2 = jnp.repeat(b2, hidden)

    # ---- fc1 + final transpose as one flat map: (n_chars*hidden) -> (seq_len*n_chars) ----
    # TODO(synk): t_mat = eye(n_chars) x wfc1^T is block-sparse; at real sizes restructure
    # this stage as a (B*n_chars, hidden) x (hidden, seq_len) matmul instead of the dense map.
    eye = jnp.eye(n_chars, dtype=f32)
    t_mat = (eye[:, None, None, :] * wfc1.T[None, :, :, None]
             ).reshape(n_chars * hidden, seq_len * n_chars)
    t_bias = jnp.repeat(bfc1, n_chars)                           # (seq_len*n_chars,)

    # ---- fold each BatchNorm into the linear map that follows it ----
    m1p = s0[:, None] * m1
    c1p = t0 @ m1 + c1
    m2p = s1[:, None] * m2
    c2p = t1 @ m2 + c2
    tp = s2[:, None] * t_mat
    tbp = t2 @ t_mat + t_bias

    # ---- 0/1 grouping maps for the per-position softmax denominators ----
    sc = seq_len * n_chars
    grp = (jnp.arange(sc)[:, None] // n_chars ==
           jnp.arange(seq_len)[None, :]).astype(f32)             # (sc, seq_len)
    grpt = grp.T                                                 # (seq_len, sc)

    return (wl.T.astype(bf16), bl.reshape(1, -1).astype(f32),
            m1p.astype(bf16), c1p.reshape(1, -1).astype(f32),
            m2p.astype(bf16), c2p.reshape(1, -1).astype(f32),
            tp.astype(bf16), tbp.reshape(1, -1).astype(f32),
            grp, grpt)


def generator_forward(z, folded, gumbel, *, seq_len, n_chars, tau=0.5, batch_tile=128):
    """z: (B, z_dim); gumbel: (B, seq_len, n_chars) pre-sampled Gumbel(0,1) noise.
    `folded` comes from fold_generator_params (computed once, not per step).
    Returns (B, seq_len, n_chars) float32 soft gumbel-softmax samples."""
    (wl_t, bl, m1, c1, m2, c2, tp, tb, grp, grpt) = folded
    B, z_dim = z.shape
    sc = seq_len * n_chars

    # Tile the batch (matmul M) dimension; "parallel" lets v7x split tiles over its two
    # TensorCores and pipelines z/gumbel DMA against compute for large B.  Weight blocks
    # are grid-invariant so they are only DMA'd into VMEM once.
    bt = batch_tile if (B >= batch_tile and B % batch_tile == 0) else B
    grid = (B // bt,)

    def bcast(arr):
        return pl.BlockSpec(arr.shape, lambda i: (0, 0))

    out = pl.pallas_call(
        _make_generator_kernel(1.0 / tau),
        out_shape=jax.ShapeDtypeStruct((B, sc), jnp.float32),
        grid_spec=pltpu.PrefetchScalarGridSpec(
            num_scalar_prefetch=0,
            grid=grid,
            in_specs=[pl.BlockSpec((bt, z_dim), lambda i: (i, 0)),
                      bcast(wl_t), bcast(bl),
                      bcast(m1), bcast(c1),
                      bcast(m2), bcast(c2),
                      bcast(tp), bcast(tb),
                      bcast(grp), bcast(grpt),
                      pl.BlockSpec((bt, sc), lambda i: (i, 0))],
            out_specs=pl.BlockSpec((bt, sc), lambda i: (i, 0)),
        ),
        compiler_params=pltpu.CompilerParams(
            dimension_semantics=("parallel",),
            vmem_limit_bytes=32 * 1024 * 1024),
    )(z.astype(jnp.bfloat16), wl_t, bl, m1, c1, m2, c2, tp, tb, grp, grpt,
      gumbel.reshape(B, sc).astype(jnp.float32))

    # Lane-dense store in the kernel; this reshape is free (no transpose).
    return out.reshape(B, seq_len, n_chars)


# ----------------------------- parameter setup --------------------------------

def _xavier_uniform(key, shape, fan_in, fan_out):
    bound = (6.0 / (fan_in + fan_out)) ** 0.5
    return jax.random.uniform(key, shape, jnp.float32, -bound, bound)


def make_params(key, *, z_dim, hidden, stride, kernel_size, seq_len, n_chars):
    f0 = n_chars * stride ** 2
    f1 = f0 // stride
    hn = hidden * n_chars
    ks = jax.random.split(key, 20)

    def bn_params(k_g, k_b, k_m, k_v, n):
        gamma = jax.random.uniform(k_g, (n,), jnp.float32, 0.5, 1.5)
        beta = 0.1 * jax.random.normal(k_b, (n,), jnp.float32)
        rmean = 0.1 * jax.random.normal(k_m, (n,), jnp.float32)
        rvar = jax.random.uniform(k_v, (n,), jnp.float32, 0.5, 1.5)
        return gamma, beta, rmean, rvar

    lin_b = 1.0 / (z_dim ** 0.5)
    wl = jax.random.uniform(ks[0], (hn, z_dim), jnp.float32, -lin_b, lin_b)
    bl = jax.random.uniform(ks[1], (hn,), jnp.float32, -lin_b, lin_b)
    g1, be1, rm1, rv1 = bn_params(ks[2], ks[3], ks[4], ks[5], hn)

    w1 = _xavier_uniform(ks[6], (f0, f1, kernel_size),
                         f0 * kernel_size, f1 * kernel_size)
    b1 = jax.random.uniform(ks[7], (f1,), jnp.float32, -0.05, 0.05)
    g2, be2, rm2, rv2 = bn_params(ks[8], ks[9], ks[10], ks[11], f1)

    w2 = _xavier_uniform(ks[12], (f1, n_chars, kernel_size),
                         f1 * kernel_size, n_chars * kernel_size)
    b2 = jax.random.uniform(ks[13], (n_chars,), jnp.float32, -0.05, 0.05)
    g3, be3, rm3, rv3 = bn_params(ks[14], ks[15], ks[16], ks[17], n_chars)

    fc_b = 1.0 / (hidden ** 0.5)
    wfc1 = jax.random.uniform(ks[18], (seq_len, hidden), jnp.float32, -fc_b, fc_b)
    bfc1 = jax.random.uniform(ks[19], (seq_len,), jnp.float32, -fc_b, fc_b)

    return (wl, bl, g1, be1, rm1, rv1,
            w1, b1, g2, be2, rm2, rv2,
            w2, b2, g3, be3, rm3, rv3,
            wfc1, bfc1)


# ----------------------------- references ------------------------------------

def _conv_transpose1d_ref(x, w, b, stride, padding):
    bsz, c_in, l_in = x.shape
    _, c_out, k = w.shape
    l_full = (l_in - 1) * stride + k
    out = jnp.zeros((bsz, c_out, l_full), x.dtype)
    for i in range(l_in):
        contrib = jnp.einsum('bc,cok->bok', x[:, :, i], w)
        out = out.at[:, :, i * stride:i * stride + k].add(contrib)
    return out[:, :, padding:l_full - padding] + b[None, :, None]


def reference_forward(z, params, gumbel, *, hidden, stride, kernel_size,
                      seq_len, n_chars, tau=0.5, eps=1e-5):
    """Torch-style all-f32 reference of Generator.forward (eval-mode BN, soft gumbel)."""
    (wl, bl, g1, be1, rm1, rv1,
     w1, b1, g2, be2, rm2, rv2,
     w2, b2, g3, be3, rm3, rv3,
     wfc1, bfc1) = params
    B = z.shape[0]
    l0 = hidden // stride ** 2
    f0 = n_chars * stride ** 2

    def bn(x, g, be, rm, rv):
        if x.ndim == 3:
            g, be, rm, rv = (a[None, :, None] for a in (g, be, rm, rv))
        return (x - rm) / jnp.sqrt(rv + eps) * g + be

    h = z @ wl.T + bl
    h = jnp.maximum(h, 0.0)
    h = bn(h, g1, be1, rm1, rv1)
    x = h.reshape(B, f0, l0)
    x = _conv_transpose1d_ref(x, w1, b1, stride, 2)
    x = jnp.maximum(x, 0.0)
    x = bn(x, g2, be2, rm2, rv2)
    x = _conv_transpose1d_ref(x, w2, b2, stride, 2)
    x = jnp.maximum(x, 0.0)
    x = bn(x, g3, be3, rm3, rv3)
    y = jnp.einsum('bcl,sl->bcs', x, wfc1) + bfc1           # fc1 on the last axis
    y = jnp.transpose(y, (0, 2, 1))                         # (B, seq_len, n_chars)
    return jax.nn.softmax((y + gumbel) / tau, axis=-1)


def folded_reference(z, folded, gumbel, *, seq_len, n_chars, tau=0.5):
    """Pure-JAX recomputation of the kernel math with the same bf16-cast operands."""
    (wl_t, bl, m1, c1, m2, c2, tp, tb, grp, grpt) = folded
    f32, bf16 = jnp.float32, jnp.bfloat16
    B = z.shape[0]
    h = jnp.dot(z.astype(bf16), wl_t, preferred_element_type=f32) + bl
    h = jnp.maximum(h, 0.0)
    h = jnp.dot(h.astype(bf16), m1, preferred_element_type=f32) + c1
    h = jnp.maximum(h, 0.0)
    h = jnp.dot(h.astype(bf16), m2, preferred_element_type=f32) + c2
    h = jnp.maximum(h, 0.0)
    logits = jnp.dot(h.astype(bf16), tp, preferred_element_type=f32) + tb
    g = (logits + gumbel.reshape(B, -1)) / tau
    return jax.nn.softmax(g.reshape(B, seq_len, n_chars), axis=-1)


# ----------------------------- main -------------------------------------------

if __name__ == "__main__":
    # Small shapes consistent with the module's structural constraints
    # (kernel_size - 4 == stride, hidden % stride**2 == 0, f1 // stride == n_chars):
    B, Z_DIM, HIDDEN, STRIDE, KSIZE, SEQ_LEN, N_CHARS = 2, 16, 32, 4, 8, 16, 8

    key = jax.random.PRNGKey(0)
    kz, kp, kg = jax.random.split(key, 3)
    z = jax.random.normal(kz, (B, Z_DIM), jnp.float32)
    params = make_params(kp, z_dim=Z_DIM, hidden=HIDDEN, stride=STRIDE,
                         kernel_size=KSIZE, seq_len=SEQ_LEN, n_chars=N_CHARS)
    # Gumbel noise for gumbel_softmax is sampled once and shared by kernel + references.
    gumbel = jax.random.gumbel(kg, (B, SEQ_LEN, N_CHARS), jnp.float32)

    # One-time folding (hoisted out of the per-step path).
    folded = fold_generator_params(params, hidden=HIDDEN, stride=STRIDE,
                                   kernel_size=KSIZE, seq_len=SEQ_LEN, n_chars=N_CHARS)
    folded = jax.block_until_ready(folded)

    out = generator_forward(z, folded, gumbel, seq_len=SEQ_LEN, n_chars=N_CHARS)
    out = jax.block_until_ready(out)

    assert out.shape == (B, SEQ_LEN, N_CHARS), out.shape
    # Every per-position softmax must sum to ~1 (MXU group sums + approx reciprocal).
    assert bool(jnp.allclose(jnp.sum(out, axis=-1), 1.0, atol=1e-2)), "rows must sum to 1"

    # Tight check vs a pure-JAX recomputation of the same folded / bf16 math.
    ref_folded = folded_reference(z, folded, gumbel, seq_len=SEQ_LEN, n_chars=N_CHARS)
    assert bool(jnp.allclose(out, ref_folded, rtol=1.5e-2, atol=1.5e-2)), "kernel != folded ref"

    # Looser check vs the torch-style all-f32 reference (kernel uses bf16 MXU operands).
    ref = reference_forward(z, params, gumbel, hidden=HIDDEN, stride=STRIDE,
                            kernel_size=KSIZE, seq_len=SEQ_LEN, n_chars=N_CHARS)
    assert bool(jnp.allclose(out, ref, rtol=5e-2, atol=5e-2)), "kernel != f32 reference"

    print("KERNEL_OK")
</pallas_src>

<mosaic_0001>
module attributes {stable_mosaic.version = 11 : i64} {
  func.func @kernel(%arg0: i32, %arg1: memref<2x16xbf16, #tpu.memory_space<vmem>>, %arg2: memref<16x256xbf16, #tpu.memory_space<vmem>>, %arg3: memref<1x256xf32, #tpu.memory_space<vmem>>, %arg4: memref<256x256xbf16, #tpu.memory_space<vmem>>, %arg5: memref<1x256xf32, #tpu.memory_space<vmem>>, %arg6: memref<256x256xbf16, #tpu.memory_space<vmem>>, %arg7: memref<1x256xf32, #tpu.memory_space<vmem>>, %arg8: memref<256x128xbf16, #tpu.memory_space<vmem>>, %arg9: memref<1x128xf32, #tpu.memory_space<vmem>>, %arg10: memref<128x16xf32, #tpu.memory_space<vmem>>, %arg11: memref<16x128xf32, #tpu.memory_space<vmem>>, %arg12: memref<2x128xf32, #tpu.memory_space<vmem>>, %arg13: memref<2x128xf32, #tpu.memory_space<vmem>>) attributes {dimension_semantics = [#tpu.dimension_semantics<parallel>], iteration_bounds = array<i64: 1>, scalar_prefetch = 0 : i64, scratch_operands = 0 : i64, tpu.core_type = #tpu.core_type<tc>, window_params = [{transform_indices = @transform_0, window_bounds = array<i64: 2, 16>}, {pipeline_mode = #tpu.pipeline_mode<synchronous>, transform_indices = @transform_1, window_bounds = array<i64: 16, 256>}, {pipeline_mode = #tpu.pipeline_mode<synchronous>, transform_indices = @transform_2, window_bounds = array<i64: 1, 256>}, {pipeline_mode = #tpu.pipeline_mode<synchronous>, transform_indices = @transform_3, window_bounds = array<i64: 256, 256>}, {pipeline_mode = #tpu.pipeline_mode<synchronous>, transform_indices = @transform_4, window_bounds = array<i64: 1, 256>}, {pipeline_mode = #tpu.pipeline_mode<synchronous>, transform_indices = @transform_5, window_bounds = array<i64: 256, 256>}, {pipeline_mode = #tpu.pipeline_mode<synchronous>, transform_indices = @transform_6, window_bounds = array<i64: 1, 256>}, {pipeline_mode = #tpu.pipeline_mode<synchronous>, transform_indices = @transform_7, window_bounds = array<i64: 256, 128>}, {pipeline_mode = #tpu.pipeline_mode<synchronous>, transform_indices = @transform_8, window_bounds = array<i64: 1, 128>}, {pipeline_mode = #tpu.pipeline_mode<synchronous>, transform_indices = @transform_9, window_bounds = array<i64: 128, 16>}, {pipeline_mode = #tpu.pipeline_mode<synchronous>, transform_indices = @transform_10, window_bounds = array<i64: 16, 128>}, {transform_indices = @transform_11, window_bounds = array<i64: 2, 128>}, {transform_indices = @transform_12, window_bounds = array<i64: 2, 128>}]} {
    %c0 = arith.constant 0 : index
    %c0_0 = arith.constant 0 : index
    %0 = vector.load %arg1[%c0, %c0_0] : memref<2x16xbf16, #tpu.memory_space<vmem>>, vector<2x16xbf16>
    %c0_1 = arith.constant 0 : index
    %c0_2 = arith.constant 0 : index
    %1 = vector.load %arg2[%c0_1, %c0_2] : memref<16x256xbf16, #tpu.memory_space<vmem>>, vector<16x256xbf16>
    %cst = arith.constant dense<0.000000e+00> : vector<2x256xf32>
    %2 = tpu.matmul %0, %1, %cst {dimension_numbers = #tpu.dot_dimension_numbers<[1], [0], [0], [1], [0, 0, 1, 1], [], []>} : vector<2x16xbf16>, vector<16x256xbf16>, vector<2x256xf32> -> vector<2x256xf32>
    %c0_3 = arith.constant 0 : index
    %c0_4 = arith.constant 0 : index
    %3 = vector.load %arg3[%c0_3, %c0_4] : memref<1x256xf32, #tpu.memory_space<vmem>>, vector<1x256xf32>
    %4 = vector.broadcast %3 : vector<1x256xf32> to vector<2x256xf32>
    %5 = arith.addf %2, %4 : vector<2x256xf32>
    %cst_5 = arith.constant 0.000000e+00 : f32
    %6 = vector.broadcast %cst_5 : f32 to vector<2x256xf32>
    %7 = arith.maximumf %5, %6 : vector<2x256xf32>
    %8 = arith.truncf %7 : vector<2x256xf32> to vector<2x256xbf16>
    %c0_6 = arith.constant 0 : index
    %c0_7 = arith.constant 0 : index
    %9 = vector.load %arg4[%c0_6, %c0_7] : memref<256x256xbf16, #tpu.memory_space<vmem>>, vector<256x256xbf16>
    %cst_8 = arith.constant dense<0.000000e+00> : vector<2x256xf32>
    %10 = tpu.matmul %8, %9, %cst_8 {dimension_numbers = #tpu.dot_dimension_numbers<[1], [0], [0], [1], [0, 0, 1, 1], [], []>} : vector<2x256xbf16>, vector<256x256xbf16>, vector<2x256xf32> -> vector<2x256xf32>
    %c0_9 = arith.constant 0 : index
    %c0_10 = arith.constant 0 : index
    %11 = vector.load %arg5[%c0_9, %c0_10] : memref<1x256xf32, #tpu.memory_space<vmem>>, vector<1x256xf32>
    %12 = vector.broadcast %11 : vector<1x256xf32> to vector<2x256xf32>
    %13 = arith.addf %10, %12 : vector<2x256xf32>
    %cst_11 = arith.constant 0.000000e+00 : f32
    %14 = vector.broadcast %cst_11 : f32 to vector<2x256xf32>
    %15 = arith.maximumf %13, %14 : vector<2x256xf32>
    %16 = arith.truncf %15 : vector<2x256xf32> to vector<2x256xbf16>
    %c0_12 = arith.constant 0 : index
    %c0_13 = arith.constant 0 : index
    %17 = vector.load %arg6[%c0_12, %c0_13] : memref<256x256xbf16, #tpu.memory_space<vmem>>, vector<256x256xbf16>
    %cst_14 = arith.constant dense<0.000000e+00> : vector<2x256xf32>
    %18 = tpu.matmul %16, %17, %cst_14 {dimension_numbers = #tpu.dot_dimension_numbers<[1], [0], [0], [1], [0, 0, 1, 1], [], []>} : vector<2x256xbf16>, vector<256x256xbf16>, vector<2x256xf32> -> vector<2x256xf32>
    %c0_15 = arith.constant 0 : index
    %c0_16 = arith.constant 0 : index
    %19 = vector.load %arg7[%c0_15, %c0_16] : memref<1x256xf32, #tpu.memory_space<vmem>>, vector<1x256xf32>
    %20 = vector.broadcast %19 : vector<1x256xf32> to vector<2x256xf32>
    %21 = arith.addf %18, %20 : vector<2x256xf32>
    %cst_17 = arith.constant 0.000000e+00 : f32
    %22 = vector.broadcast %cst_17 : f32 to vector<2x256xf32>
    %23 = arith.maximumf %21, %22 : vector<2x256xf32>
    %24 = arith.truncf %23 : vector<2x256xf32> to vector<2x256xbf16>
    %c0_18 = arith.constant 0 : index
    %c0_19 = arith.constant 0 : index
    %25 = vector.load %arg8[%c0_18, %c0_19] : memref<256x128xbf16, #tpu.memory_space<vmem>>, vector<256x128xbf16>
    %cst_20 = arith.constant dense<0.000000e+00> : vector<2x128xf32>
    %26 = tpu.matmul %24, %25, %cst_20 {dimension_numbers = #tpu.dot_dimension_numbers<[1], [0], [0], [1], [0, 0, 1, 1], [], []>} : vector<2x256xbf16>, vector<256x128xbf16>, vector<2x128xf32> -> vector<2x128xf32>
    %c0_21 = arith.constant 0 : index
    %c0_22 = arith.constant 0 : index
    %27 = vector.load %arg9[%c0_21, %c0_22] : memref<1x128xf32, #tpu.memory_space<vmem>>, vector<1x128xf32>
    %28 = vector.broadcast %27 : vector<1x128xf32> to vector<2x128xf32>
    %29 = arith.addf %26, %28 : vector<2x128xf32>
    %c0_23 = arith.constant 0 : index
    %c0_24 = arith.constant 0 : index
    %30 = vector.load %arg12[%c0_23, %c0_24] : memref<2x128xf32, #tpu.memory_space<vmem>>, vector<2x128xf32>
    %31 = arith.addf %29, %30 : vector<2x128xf32>
    %cst_25 = arith.constant 2.000000e+00 : f32
    %32 = vector.broadcast %cst_25 : f32 to vector<2x128xf32>
    %33 = arith.mulf %31, %32 : vector<2x128xf32>
    %cst_26 = arith.constant dense<0xFF800000> : vector<2xf32>
    %34 = vector.multi_reduction <maximumf>, %33, %cst_26 [1] : vector<2x128xf32> to vector<2xf32>
    %35 = vector.shape_cast %34 : vector<2xf32> to vector<2x1xf32>
    %36 = vector.broadcast %35 : vector<2x1xf32> to vector<2x128xf32>
    %37 = arith.subf %33, %36 : vector<2x128xf32>
    %38 = math.exp %37 : vector<2x128xf32>
    %c0_27 = arith.constant 0 : index
    %c0_28 = arith.constant 0 : index
    %39 = vector.load %arg10[%c0_27, %c0_28] : memref<128x16xf32, #tpu.memory_space<vmem>>, vector<128x16xf32>
    %cst_29 = arith.constant dense<0.000000e+00> : vector<2x16xf32>
    %40 = tpu.matmul %38, %39, %cst_29 {dimension_numbers = #tpu.dot_dimension_numbers<[1], [0], [0], [1], [0, 0, 1, 1], [], []>} : vector<2x128xf32>, vector<128x16xf32>, vector<2x16xf32> -> vector<2x16xf32>
    %c0_30 = arith.constant 0 : index
    %c0_31 = arith.constant 0 : index
    %41 = vector.load %arg11[%c0_30, %c0_31] : memref<16x128xf32, #tpu.memory_space<vmem>>, vector<16x128xf32>
    %cst_32 = arith.constant dense<0.000000e+00> : vector<2x128xf32>
    %42 = tpu.matmul %40, %41, %cst_32 {dimension_numbers = #tpu.dot_dimension_numbers<[1], [0], [0], [1], [0, 0, 1, 1], [], []>} : vector<2x16xf32>, vector<16x128xf32>, vector<2x128xf32> -> vector<2x128xf32>
    %43 = tpu.reciprocal %42 {approx = true} : vector<2x128xf32> -> vector<2x128xf32>
    %44 = arith.mulf %38, %43 : vector<2x128xf32>
    %c0_33 = arith.constant 0 : index
    %c0_34 = arith.constant 0 : index
    %45 = vector.load %arg13[%c0_33, %c0_34] : memref<2x128xf32, #tpu.memory_space<vmem>>, vector<2x128xf32>
    tpu.vector_store %arg13[%c0_33, %c0_34], %44 {strides = array<i32>} : memref<2x128xf32, #tpu.memory_space<vmem>>, vector<2x128xf32>,
    return
  }
  func.func @transform_0(%arg0: i32) -> (i32, i32) {
    %c0_i32 = arith.constant 0 : i32
    %c0_i32_0 = arith.constant 0 : i32
    return %arg0, %c0_i32 : i32, i32
  }
  func.func @transform_1(%arg0: i32) -> (i32, i32) {
    %c0_i32 = arith.constant 0 : i32
    %c0_i32_0 = arith.constant 0 : i32
    %c0_i32_1 = arith.constant 0 : i32
    return %c0_i32, %c0_i32_0 : i32, i32
  }
  func.func @transform_2(%arg0: i32) -> (i32, i32) {
    %c0_i32 = arith.constant 0 : i32
    %c0_i32_0 = arith.constant 0 : i32
    %c0_i32_1 = arith.constant 0 : i32
    return %c0_i32, %c0_i32_0 : i32, i32
  }
  func.func @transform_3(%arg0: i32) -> (i32, i32) {
    %c0_i32 = arith.constant 0 : i32
    %c0_i32_0 = arith.constant 0 : i32
    %c0_i32_1 = arith.constant 0 : i32
    return %c0_i32, %c0_i32_0 : i32, i32
  }
  func.func @transform_4(%arg0: i32) -> (i32, i32) {
    %c0_i32 = arith.constant 0 : i32
    %c0_i32_0 = arith.constant 0 : i32
    %c0_i32_1 = arith.constant 0 : i32
    return %c0_i32, %c0_i32_0 : i32, i32
  }
  func.func @transform_5(%arg0: i32) -> (i32, i32) {
    %c0_i32 = arith.constant 0 : i32
    %c0_i32_0 = arith.constant 0 : i32
    %c0_i32_1 = arith.constant 0 : i32
    return %c0_i32, %c0_i32_0 : i32, i32
  }
  func.func @transform_6(%arg0: i32) -> (i32, i32) {
    %c0_i32 = arith.constant 0 : i32
    %c0_i32_0 = arith.constant 0 : i32
    %c0_i32_1 = arith.constant 0 : i32
    return %c0_i32, %c0_i32_0 : i32, i32
  }
  func.func @transform_7(%arg0: i32) -> (i32, i32) {
    %c0_i32 = arith.constant 0 : i32
    %c0_i32_0 = arith.constant 0 : i32
    %c0_i32_1 = arith.constant 0 : i32
    return %c0_i32, %c0_i32_0 : i32, i32
  }
  func.func @transform_8(%arg0: i32) -> (i32, i32) {
    %c0_i32 = arith.constant 0 : i32
    %c0_i32_0 = arith.constant 0 : i32
    %c0_i32_1 = arith.constant 0 : i32
    return %c0_i32, %c0_i32_0 : i32, i32
  }
  func.func @transform_9(%arg0: i32) -> (i32, i32) {
    %c0_i32 = arith.constant 0 : i32
    %c0_i32_0 = arith.constant 0 : i32
    %c0_i32_1 = arith.constant 0 : i32
    return %c0_i32, %c0_i32_0 : i32, i32
  }
  func.func @transform_10(%arg0: i32) -> (i32, i32) {
    %c0_i32 = arith.constant 0 : i32
    %c0_i32_0 = arith.constant 0 : i32
    %c0_i32_1 = arith.constant 0 : i32
    return %c0_i32, %c0_i32_0 : i32, i32
  }
  func.func @transform_11(%arg0: i32) -> (i32, i32) {
    %c0_i32 = arith.constant 0 : i32
    %c0_i32_0 = arith.constant 0 : i32
    return %arg0, %c0_i32 : i32, i32
  }
  func.func @transform_12(%arg0: i32) -> (i32, i32) {
    %c0_i32 = arith.constant 0 : i32
    %c0_i32_0 = arith.constant 0 : i32
    return %arg0, %c0_i32 : i32, i32
  }
}

</mosaic_0001>

<bundles_post_ra>
// kernel: tpu_custom_call.1
= control target key start
LH: loop header
LB: loop body
LE: loop exit
PB: predicated region body
PF: predicated region fallthrough
CT: control target
= control target key end

     0   :  { %17 = vsyncpa [#allocation3], 0  ;;  %s1830_s0 = inlined_call_operand.hbm [shape: bf16[2,16], index: 0, kind: input, shape index: {}]   ;;  %s1831_s1 = inlined_call_operand.vmem [shape: bf16[16,256], index: 1, kind: input, shape index: {}]   ;;  %s1832_s2 = inlined_call_operand.hbm [shape: f32[1,256], index: 2, kind: input, shape index: {}]   ;;  %s1833_s3 = inlined_call_operand.hbm [shape: bf16[256,256], index: 3, kind: input, shape index: {}]   ;;  %s1834_s4 = inlined_call_operand.hbm [shape: f32[1,256], index: 4, kind: input, shape index: {}]   ;;  %s1835_s5 = inlined_call_operand.hbm [shape: bf16[256,256], index: 5, kind: input, shape index: {}]   ;;  %s1836_s6 = inlined_call_operand.hbm [shape: f32[1,256], index: 6, kind: input, shape index: {}]   ;;  %s1837_s7 = inlined_call_operand.vmem [shape: bf16[256,128], index: 7, kind: input, shape index: {}]   ;;  %s1838_s8 = inlined_call_operand.hbm [shape: f32[1,128], index: 8, kind: input, shape index: {}]   ;;  %s1839_s9 = inlined_call_operand.vmem [shape: f32[128,16], index: 9, kind: input, shape index: {}]   ;;  %s1840_s10 = inlined_call_operand.hbm [shape: f32[16,128], index: 10, kind: input, shape index: {}]   ;;  %s1841_s11 = inlined_call_operand.vmem [shape: f32[2,128], index: 11, kind: input, shape index: {}]   ;;  %s1842_s12 = inlined_call_operand.hbm [shape: f32[2,128], index: 12, kind: output, shape index: {}]  }
   0x1   :  { %18 = vsyncpa [#allocation6], 0 }
   0x2   :  { %19 = vsyncpa [#allocation9], 0 }
   0x3   :  { %20 = vsyncpa [#allocation12], 0 }
   0x4   :  { %21 = vsyncpa [#allocation15], 0 }
   0x5   :  { %22 = vsyncpa [#allocation4], 0  ;;  %s1576_s21 = smov [#allocation5]   ;;  %s1577_s23 = smov [#allocation8]  }
   0x6   :  { %s41_s22 = sshll.u32 %s1576_s21, 4  ;;  %s63_s24 = sshll.u32 %s1577_s23, 4  ;;  %s42_s22 = int_to_ptr.vmem [resolvable:$true] %s41_s22  ;;  %s64_s24 = int_to_ptr.vmem [resolvable:$true] %s63_s24 }
   0x7   :  { %s1392_s25 = scalar_lea.vmem %s42_s22, 32  ;;  %p1397_p1 = scmp.lt.s32.totalorder %s42_s22, %s42_s22 }
   0x8   :  { %p1393_p0 = scmp.ne.s32.totalorder %s42_s22, %s1392_s25  ;;  %p1398_p2 = scmp.lt.s32.totalorder %s1392_s25, %s1392_s25 }
   0xa   :  { %p1399_p3 = por %p1398_p2, %p1397_p1 }
   0xc   :  { %p1400_p4 = pnand %p1399_p3, %p1393_p0 }
   0xe   :  { %1403 = shalt.err (!%p1400_p4)
}
   0xf   :  { %44 = dma.hbm_to_vmem [thread:$0]  %s1832_s2, 32, %s42_s22, [#allocation6]  }
  0x10   :  { %s1412_s28 = scalar_lea.vmem %s64_s24, 32  ;;  %p1417_p6 = scmp.lt.s32.totalorder %s64_s24, %s64_s24 }
  0x11   :  { %p1413_p5 = scmp.ne.s32.totalorder %s64_s24, %s1412_s28  ;;  %p1418_p7 = scmp.lt.s32.totalorder %s1412_s28, %s1412_s28 }
  0x13   :  { %p1419_p8 = por %p1418_p7, %p1417_p6 }
  0x15   :  { %p1420_p9 = pnand %p1419_p8, %p1413_p5 }
  0x17   :  { %1423 = shalt.err (!%p1420_p9)
}
  0x18   :  { %66 = dma.hbm_to_vmem [thread:$0]  %s1834_s4, 32, %s64_s24, [#allocation9]  }
  0x19   :  { %s1578_s13 = smov [#allocation11]   ;;  %s1579_s15 = smov [#allocation2]  }
  0x1a   :  { %s85_s14 = sshll.u32 %s1578_s13, 4  ;;  %s29_s16 = sshll.u32 %s1579_s15, 4  ;;  %s86_s14 = int_to_ptr.vmem [resolvable:$true] %s85_s14  ;;  %s30_s16 = int_to_ptr.vmem [resolvable:$true] %s29_s16 }
  0x1b   :  { %s1432_s17 = scalar_lea.vmem %s86_s14, 32  ;;  %p1437_p11 = scmp.lt.s32.totalorder %s86_s14, %s86_s14 }
  0x1c   :  { %p1433_p10 = scmp.ne.s32.totalorder %s86_s14, %s1432_s17  ;;  %p1438_p12 = scmp.lt.s32.totalorder %s1432_s17, %s1432_s17 }
  0x1e   :  { %p1439_p13 = por %p1438_p12, %p1437_p11 }
  0x20   :  { %p1440_p0 = pnand %p1439_p13, %p1433_p10 }
  0x22   :  { %1443 = shalt.err (!%p1440_p0)
}
  0x23   :  { %88 = dma.hbm_to_vmem [thread:$0]  %s1836_s6, 32, %s86_s14, [#allocation12]  }
  0x24   :  { %s1452_s19 = scalar_lea.vmem %s30_s16, 16  ;;  %s1456_s4 = scalar_lea.vmem %s30_s16, 32 }
  0x25   :  { %p1453_p1 = scmp.ne.s32.totalorder %s30_s16, %s1452_s19  ;;  %p1457_p2 = scmp.lt.s32.totalorder %s30_s16, %s30_s16 }
  0x26   :  { %p1458_p3 = scmp.lt.s32.totalorder %s1456_s4, %s1452_s19 }
  0x28   :  { %p1459_p4 = por %p1458_p3, %p1457_p2 }
  0x2a   :  { %p1460_p5 = pnand %p1459_p4, %p1453_p1 }
  0x2c   :  { %1463 = shalt.err (!%p1460_p5)
}
  0x2d   :  { %32 = dma.hbm_to_vmem [thread:$0]  %s1830_s0, 16, %s30_s16, [#allocation3]  }
  0x2e   :  { %s1580_s22 = smov [#allocation7]  }
  0x2f   :  { %s50_s23 = sshll.u32 %s1580_s22, 4  ;;  %s51_s23 = int_to_ptr.vmem [resolvable:$true] %s50_s23 }
  0x30   :  { %s1472_s24 = scalar_lea.vmem %s51_s23, 4096  ;;  %p1477_p7 = scmp.lt.s32.totalorder %s51_s23, %s51_s23 }
  0x31   :  { %p1473_p6 = scmp.ne.s32.totalorder %s51_s23, %s1472_s24  ;;  %p1478_p8 = scmp.lt.s32.totalorder %s1472_s24, %s1472_s24 }
  0x33   :  { %p1479_p9 = por %p1478_p8, %p1477_p7 }
  0x35   :  { %p1480_p10 = pnand %p1479_p9, %p1473_p6 }
  0x37   :  { %1483 = shalt.err (!%p1480_p10)
}
  0x38   :  { %s1581_s6 = smov 128   ;;  %s1582_s25 = smov 8  }
  0x39   :  { %56 = dma.hbm_to_vmem [thread:$0]  %s1833_s3, 4096, %s51_s23, [#allocation6], %s1581_s6, %s1581_s6, %s1582_s25  }
  0x3a   :  { %s1583_s0 = smov [#allocation10]   ;;  %s1584_s29 = smov [#allocation13]  }
  0x3b   :  { %s72_s28 = sshll.u32 %s1583_s0, 4  ;;  %s97_s30 = sshll.u32 %s1584_s29, 4  ;;  %s73_s28 = int_to_ptr.vmem [resolvable:$true] %s72_s28  ;;  %s98_s30 = int_to_ptr.vmem [resolvable:$true] %s97_s30 }
  0x3c   :  { %s1492_s13 = scalar_lea.vmem %s73_s28, 4096  ;;  %p1497_p12 = scmp.lt.s32.totalorder %s73_s28, %s73_s28 }
  0x3d   :  { %p1493_p11 = scmp.ne.s32.totalorder %s73_s28, %s1492_s13  ;;  %p1498_p13 = scmp.lt.s32.totalorder %s1492_s13, %s1492_s13 }
  0x3f   :  { %p1499_p0 = por %p1498_p13, %p1497_p12 }
  0x41   :  { %p1500_p1 = pnand %p1499_p0, %p1493_p11 }
  0x43   :  { %1503 = shalt.err (!%p1500_p1)
}
  0x44   :  { %78 = dma.hbm_to_vmem [thread:$0]  %s1835_s5, 4096, %s73_s28, [#allocation9], %s1581_s6, %s1581_s6, %s1582_s25  }
  0x45   :  { %s1512_s3 = scalar_lea.vmem %s98_s30, 16  ;;  %s1516_s16 = scalar_lea.vmem %s98_s30, 32 }
  0x46   :  { %p1513_p2 = scmp.ne.s32.totalorder %s98_s30, %s1512_s3  ;;  %p1517_p3 = scmp.lt.s32.totalorder %s98_s30, %s98_s30 }
  0x47   :  { %p1518_p4 = scmp.lt.s32.totalorder %s1516_s16, %s1512_s3 }
  0x49   :  { %p1519_p5 = por %p1518_p4, %p1517_p3 }
  0x4b   :  { %p1520_p6 = pnand %p1519_p5, %p1513_p2 }
  0x4d   :  { %1523 = shalt.err (!%p1520_p6)
}
  0x4e   :  { %100 = dma.hbm_to_vmem [thread:$0]  %s1838_s8, 16, %s98_s30, [#allocation12]  }
  0x4f   :  { %s1585_s18 = smov [#allocation14]  }
  0x50   :  { %s108_s19 = sshll.u32 %s1585_s18, 4  ;;  %s109_s19 = int_to_ptr.vmem [resolvable:$true] %s108_s19 }
  0x51   :  { %s1532_s4 = scalar_lea.vmem %s109_s19, 256  ;;  %p1537_p8 = scmp.lt.s32.totalorder %s109_s19, %s109_s19 }
  0x52   :  { %p1533_p7 = scmp.ne.s32.totalorder %s109_s19, %s1532_s4  ;;  %p1538_p9 = scmp.lt.s32.totalorder %s1532_s4, %s1532_s4 }
  0x54   :  { %p1539_p10 = por %p1538_p9, %p1537_p8 }
  0x56   :  { %p1540_p11 = pnand %p1539_p10, %p1533_p7 }
  0x58   :  { %1543 = shalt.err (!%p1540_p11)
}
  0x59   :  { %114 = dma.hbm_to_vmem [thread:$0]  %s1840_s10, 256, %s109_s19, [#allocation15], %s1581_s6, %s1581_s6, %s1582_s25  }
  0x5a   :  { %1564 = dma.done.wait [#allocation3], 16  }
  0x5b   :  { %1565 = vsyncadd [#allocation3], 4294967280 }
  0x5c   :  { %1566 = dma.done.wait [#allocation6], 4128  }
  0x5d   :  { %1567 = vsyncadd [#allocation6], 4294963168 }
  0x5e   :  { %1568 = dma.done.wait [#allocation9], 4128  }
  0x5f   :  { %1569 = vsyncadd [#allocation9], 4294963168 }
  0x60   :  { %1570 = dma.done.wait [#allocation12], 48  }
  0x61   :  { %1571 = vsyncadd [#allocation12], 4294967248 }
  0x62   :  { %1572 = dma.done.wait [#allocation15], 256  }
  0x63   :  { %1573 = vsyncadd [#allocation15], 4294967040  ;;  %v1586_v0 = vmov 0   ;;  %v1265_v1 = vld [vmem:[%s1831_s1 + $0x4] ss:$8 sps:$4 sm:$0xff]   ;;  %vm167_vm0 = vcmask 130048  }
  0x64   :  { %203 = vmatprep.mubr.bf16.mxu0 %v1586_v0  ;;  %v1267_v2 = vld [vmem:[%s1831_s1] ss:$8 sps:$4 sm:$0xff]   ;;  %185 = vmatprep.subr.bf16.mxu0 %v1265_v1  ;;  %v1270_v5 = vld [vmem:[#allocation7 + $0x70] ss:$8 sps:$4 sm:$0xff]   ;;  %v1273_v7 = vld [vmem:[#allocation7 + $0x60] ss:$8 sps:$4 sm:$0xff]   ;;  %v147_v0 = vlaneseq }
  0x65   :  { %v142_v3 = vld [vmem:[#allocation2] sm:$0x1]  ;;  %186 = vmatpush1.bf16.msra.mxu0 %v1267_v2  ;;  %v1271_v6 = vld [vmem:[#allocation7 + $0x64] ss:$8 sps:$4 sm:$0xff]   ;;  %v1276_v9 = vld [vmem:[#allocation7 + $0x50] ss:$8 sps:$4 sm:$0xff]  }
  0x66   :  { %v1268_v4 = vld [vmem:[#allocation7 + $0x74] ss:$8 sps:$4 sm:$0xff]   ;;  %v1277_v10 = vld [vmem:[#allocation7 + $0x44] ss:$8 sps:$4 sm:$0xff]   ;;  %v1279_v11 = vld [vmem:[#allocation7 + $0x40] ss:$8 sps:$4 sm:$0xff]  }
  0x67   :  { %420 = vmatprep.subr.bf16.mxu1 %v1268_v4  ;;  %v1274_v8 = vld [vmem:[#allocation7 + $0x54] ss:$8 sps:$4 sm:$0xff]   ;;  %v1282_v13 = vld [vmem:[#allocation7 + $0x30] ss:$8 sps:$4 sm:$0xff]   ;;  %v1283_v14 = vld [vmem:[#allocation7 + $0x24] ss:$8 sps:$4 sm:$0xff]  }
  0x68   :  { %421 = vmatpush1.bf16.msra.mxu1 %v1270_v5  ;;  %1084 = vmatmul.mubr.msk.bf16.vlgmr.msra.gmra.mxu0 %vm167_vm0, %v142_v3  ;;  %v1280_v12 = vld [vmem:[#allocation7 + $0x34] ss:$8 sps:$4 sm:$0xff]   ;;  %v1285_v15 = vld [vmem:[#allocation7 + $0x20] ss:$8 sps:$4 sm:$0xff]   ;;  %v1288_v17 = vld [vmem:[#allocation7 + $0x10] ss:$8 sps:$4 sm:$0xff]  }
  0x69   :  { %422 = vmatprep.subr.bf16.mxu1 %v1271_v6  ;;  %v1286_v16 = vld [vmem:[#allocation7 + $0x14] ss:$8 sps:$4 sm:$0xff]   ;;  %v1289_v18 = vld [vmem:[#allocation7 + $0x4] ss:$8 sps:$4 sm:$0xff]   ;;  %v1291_v19 = vld [vmem:[#allocation7] ss:$8 sps:$4 sm:$0xff]  }
  0x6a   :  { %v1292_v20 = vld [vmem:[#allocation7 + $0xf4] ss:$8 sps:$4 sm:$0xff]   ;;  %v1294_v21 = vld [vmem:[#allocation7 + $0xf0] ss:$8 sps:$4 sm:$0xff]   ;;  %v1295_v22 = vld [vmem:[#allocation7 + $0xe4] ss:$8 sps:$4 sm:$0xff]  }
  0x6b   :  { %v1297_v23 = vld [vmem:[#allocation7 + $0xe0] ss:$8 sps:$4 sm:$0xff]   ;;  %v1298_v24 = vld [vmem:[#allocation7 + $0xd4] ss:$8 sps:$4 sm:$0xff]   ;;  %v1300_v25 = vld [vmem:[#allocation7 + $0xd0] ss:$8 sps:$4 sm:$0xff]  }
  0x6c   :  { %423 = vmatpush1.bf16.msra.mxu1 %v1273_v7  ;;  %v1301_v26 = vld [vmem:[#allocation7 + $0xc4] ss:$8 sps:$4 sm:$0xff]   ;;  %v1303_v27 = vld [vmem:[#allocation7 + $0xc0] ss:$8 sps:$4 sm:$0xff]   ;;  %v1304_v28 = vld [vmem:[#allocation7 + $0xb4] ss:$8 sps:$4 sm:$0xff]  }
  0x6d   :  { %424 = vmatprep.subr.bf16.mxu1 %v1274_v8  ;;  %v1306_v29 = vld [vmem:[#allocation7 + $0xb0] ss:$8 sps:$4 sm:$0xff]   ;;  %v1307_v30 = vld [vmem:[#allocation7 + $0xa4] ss:$8 sps:$4 sm:$0xff]   ;;  %v1309_v31 = vld [vmem:[#allocation7 + $0xa0] ss:$8 sps:$4 sm:$0xff]  }
  0x6e   :  { %v1310_v32 = vld [vmem:[#allocation7 + $0x94] ss:$8 sps:$4 sm:$0xff]   ;;  %v1312_v33 = vld [vmem:[#allocation7 + $0x90] ss:$8 sps:$4 sm:$0xff]   ;;  %v1313_v34 = vld [vmem:[#allocation7 + $0x84] ss:$8 sps:$4 sm:$0xff]  }
  0x6f   :  { %v1315_v35 = vld [vmem:[#allocation7 + $0x80] ss:$8 sps:$4 sm:$0xff]   ;;  %v1316_v36 = vld [vmem:[#allocation10 + $0x70] ss:$8 sps:$4 sm:$0xff]   ;;  %v148_v1 = vshrl.u32 %v147_v0, 7  ;;  %v1587_v0 = vmov 0.0  }
  0x70   :  { %425 = vmatpush1.bf16.msra.mxu1 %v1276_v9  ;;  %v1318_v37 = vld [vmem:[#allocation10 + $0x74] ss:$8 sps:$4 sm:$0xff]   ;;  %v1321_v38 = vld [vmem:[#allocation10 + $0x64] ss:$8 sps:$4 sm:$0xff]   ;;  %v1319_v39 = vld [vmem:[#allocation10 + $0x60] ss:$8 sps:$4 sm:$0xff]  }
  0x71   :  { %426 = vmatprep.subr.bf16.mxu1 %v1277_v10  ;;  %669 = vmatprep.subr.bf16.mxu0 %v1318_v37  ;;  %v1324_v40 = vld [vmem:[#allocation10 + $0x54] ss:$8 sps:$4 sm:$0xff]   ;;  %v1322_v41 = vld [vmem:[#allocation10 + $0x50] ss:$8 sps:$4 sm:$0xff]   ;;  %v1327_v42 = vld [vmem:[#allocation10 + $0x44] ss:$8 sps:$4 sm:$0xff]  }
  0x72   :  { %670 = vmatpush1.bf16.msra.mxu0 %v1316_v36  ;;  %v1325_v43 = vld [vmem:[#allocation10 + $0x40] ss:$8 sps:$4 sm:$0xff]   ;;  %v1330_v44 = vld [vmem:[#allocation10 + $0x34] ss:$8 sps:$4 sm:$0xff]   ;;  %v1328_v45 = vld [vmem:[#allocation10 + $0x30] ss:$8 sps:$4 sm:$0xff]  }
  0x73   :  { %671 = vmatprep.subr.bf16.mxu0 %v1321_v38  ;;  %v1333_v46 = vld [vmem:[#allocation10 + $0x24] ss:$8 sps:$4 sm:$0xff]   ;;  %v1331_v47 = vld [vmem:[#allocation10 + $0x20] ss:$8 sps:$4 sm:$0xff]   ;;  %v1336_v48 = vld [vmem:[#allocation10 + $0x14] ss:$8 sps:$4 sm:$0xff]  }
  0x74   :  { %427 = vmatpush1.bf16.msra.mxu1 %v1279_v11  ;;  %v1334_v49 = vld [vmem:[#allocation10 + $0x10] ss:$8 sps:$4 sm:$0xff]   ;;  %v1339_v50 = vld [vmem:[#allocation10 + $0x4] ss:$8 sps:$4 sm:$0xff]   ;;  %v1337_v51 = vld [vmem:[#allocation10] ss:$8 sps:$4 sm:$0xff]  }
  0x75   :  { %428 = vmatprep.subr.bf16.mxu1 %v1280_v12  ;;  %v1342_v52 = vld [vmem:[#allocation10 + $0xf4] ss:$8 sps:$4 sm:$0xff]   ;;  %v1340_v53 = vld [vmem:[#allocation10 + $0xf0] ss:$8 sps:$4 sm:$0xff]   ;;  %v1345_v54 = vld [vmem:[#allocation10 + $0xe4] ss:$8 sps:$4 sm:$0xff]  }
  0x76   :  { %672 = vmatpush1.bf16.msra.mxu0 %v1319_v39  ;;  %v1343_v55 = vld [vmem:[#allocation10 + $0xe0] ss:$8 sps:$4 sm:$0xff]   ;;  %v1348_v56 = vld [vmem:[#allocation10 + $0xd4] ss:$8 sps:$4 sm:$0xff]   ;;  %v1346_v57 = vld [vmem:[#allocation10 + $0xd0] ss:$8 sps:$4 sm:$0xff]  }
  0x77   :  { %673 = vmatprep.subr.bf16.mxu0 %v1324_v40  ;;  %v1351_v58 = vld [vmem:[#allocation10 + $0xc4] ss:$8 sps:$4 sm:$0xff]   ;;  %v1349_v59 = vld [vmem:[#allocation10 + $0xc0] ss:$8 sps:$4 sm:$0xff]   ;;  %v1354_v60 = vld [vmem:[#allocation10 + $0xb4] ss:$8 sps:$4 sm:$0xff]  }
  0x78   :  { %429 = vmatpush1.bf16.msra.mxu1 %v1282_v13  ;;  %v1352_v61 = vld [vmem:[#allocation10 + $0xb0] ss:$8 sps:$4 sm:$0xff]   ;;  %v1357_v62 = vld [vmem:[#allocation10 + $0xa4] ss:$8 sps:$4 sm:$0xff]   ;;  %v1355_v63 = vld [vmem:[#allocation10 + $0xa0] ss:$8 sps:$4 sm:$0xff]  }
  0x79   :  { %430 = vmatprep.subr.bf16.mxu1 %v1283_v14  ;;  %v1695_v2 = vsub.s32 0, %v148_v1  ;;  %v145_v3 = vld [vmem:[#allocation5] sm:$0x3]  ;;  %v1697_v4 = vsub.s32 1, %v148_v1  ;;  %v913_v1 = vld [vmem:[%s1839_s9 + $0x70] sm:$0xff]  ;;  %vm892_vm1 = vcmask 1041408  }
  0x7a   :  { %674 = vmatpush1.bf16.msra.mxu0 %v1322_v41  ;;  %vm1588_vm2 = vmmov 0  }
  0x7b   :  { %675 = vmatprep.subr.bf16.mxu0 %v1327_v42  ;;  %v150_v5 = vrot.slane %v145_v3, %v1695_v2  ;;  %v154_v6 = vrot.slane %v145_v3, %v1697_v4  ;;  %v911_v3 = vld [vmem:[%s1839_s9 + $0x60] sm:$0xff] }
  0x7c   :  { %431 = vmatpush1.bf16.msra.mxu1 %v1285_v15 }
  0x7d   :  { %432 = vmatprep.subr.bf16.mxu1 %v1286_v16 }
  0x7e   :  { %676 = vmatpush1.bf16.msra.mxu0 %v1325_v43 }
  0x7f   :  { %677 = vmatprep.subr.bf16.mxu0 %v1330_v44 }
  0x80   :  { %433 = vmatpush1.bf16.msra.mxu1 %v1288_v17  ;;  %v1360_v17 = vld [vmem:[#allocation10 + $0x94] ss:$8 sps:$4 sm:$0xff]  }
  0x81   :  { %434 = vmatprep.subr.bf16.mxu1 %v1289_v18  ;;  %v1358_v18 = vld [vmem:[#allocation10 + $0x90] ss:$8 sps:$4 sm:$0xff]  }
  0x82   :  { %678 = vmatpush1.bf16.msra.mxu0 %v1328_v45 }
  0x83   :  { %679 = vmatprep.subr.bf16.mxu0 %v1333_v46  ;;  %v1376_v46 = vld [vmem:[%s1837_s7 + $0x48] sm:$0xff]  }
  0x84   :  { %435 = vmatpush1.bf16.msra.mxu1 %v1291_v19  ;;  %v1363_v19 = vld [vmem:[#allocation10 + $0x84] ss:$8 sps:$4 sm:$0xff]  }
  0x85   :  { %436 = vmatprep.subr.bf16.mxu1 %v1292_v20  ;;  %v1361_v20 = vld [vmem:[#allocation10 + $0x80] ss:$8 sps:$4 sm:$0xff]  }
  0x86   :  { %680 = vmatpush1.bf16.msra.mxu0 %v1331_v47  ;;  %v1377_v47 = vld [vmem:[%s1837_s7 + $0x8] sm:$0xff]  }
  0x87   :  { %681 = vmatprep.subr.bf16.mxu0 %v1336_v48  ;;  %v1378_v48 = vld [vmem:[%s1837_s7 + $0x40] sm:$0xff]  }
  0x88   :  { %437 = vmatpush2.bf16.msra.mxu1 %v1294_v21  ;;  %v1364_v21 = vld [vmem:[%s1837_s7 + $0x78] sm:$0xff]  }
  0x89   :  { %438 = vmatprep.subr.bf16.mxu1 %v1295_v22  ;;  %v1365_v22 = vld [vmem:[%s1837_s7 + $0x38] sm:$0xff]  }
  0x8a   :  { %682 = vmatpush1.bf16.msra.mxu0 %v1334_v49  ;;  %v1379_v49 = vld [vmem:[%s1837_s7] sm:$0xff]  }
  0x8b   :  { %683 = vmatprep.subr.bf16.mxu0 %v1339_v50  ;;  %v497_v50 = vld [vmem:[#allocation11] sm:$0x3] }
  0x8c   :  { %439 = vmatpush2.bf16.msra.mxu1 %v1297_v23  ;;  %v1366_v23 = vld [vmem:[%s1837_s7 + $0x70] sm:$0xff]  }
  0x8d   :  { %440 = vmatprep.subr.bf16.mxu1 %v1298_v24  ;;  %v1367_v24 = vld [vmem:[%s1837_s7 + $0x30] sm:$0xff]  }
  0x8e   :  { %684 = vmatpush1.bf16.msra.mxu0 %v1337_v51  ;;  %v502_v51 = vrot.slane %v497_v50, %v1695_v2 }
  0x8f   :  { %685 = vmatprep.subr.bf16.mxu0 %v1342_v52  ;;  %v506_v52 = vrot.slane %v497_v50, %v1697_v4 }
  0x90   :  { %441 = vmatpush2.bf16.msra.mxu1 %v1300_v25  ;;  %v1368_v25 = vld [vmem:[%s1837_s7 + $0x68] sm:$0xff]  }
  0x91   :  { %442 = vmatprep.subr.bf16.mxu1 %v1301_v26  ;;  %v1369_v26 = vld [vmem:[%s1837_s7 + $0x28] sm:$0xff]  }
  0x92   :  { %686 = vmatpush2.bf16.msra.mxu0 %v1340_v53 }
  0x93   :  { %687 = vmatprep.subr.bf16.mxu0 %v1345_v54 }
  0x94   :  { %443 = vmatpush2.bf16.msra.mxu1 %v1303_v27  ;;  %v1370_v27 = vld [vmem:[%s1837_s7 + $0x60] sm:$0xff]  }
  0x95   :  { %444 = vmatprep.subr.bf16.mxu1 %v1304_v28  ;;  %v1371_v28 = vld [vmem:[%s1837_s7 + $0x20] sm:$0xff]  }
  0x96   :  { %688 = vmatpush2.bf16.msra.mxu0 %v1343_v55 }
  0x97   :  { %689 = vmatprep.subr.bf16.mxu0 %v1348_v56 }
  0x98   :  { %445 = vmatpush2.bf16.msra.mxu1 %v1306_v29  ;;  %v1372_v29 = vld [vmem:[%s1837_s7 + $0x58] sm:$0xff]  }
  0x99   :  { %446 = vmatprep.subr.bf16.mxu1 %v1307_v30  ;;  %v1373_v30 = vld [vmem:[%s1837_s7 + $0x18] sm:$0xff]  }
  0x9a   :  { %690 = vmatpush2.bf16.msra.mxu0 %v1346_v57 }
  0x9b   :  { %691 = vmatprep.subr.bf16.mxu0 %v1351_v58 }
  0x9c   :  { %447 = vmatpush2.bf16.msra.mxu1 %v1309_v31  ;;  %v1374_v31 = vld [vmem:[%s1837_s7 + $0x50] sm:$0xff]  }
  0x9d   :  { %448 = vmatprep.subr.bf16.mxu1 %v1310_v32  ;;  %v1375_v32 = vld [vmem:[%s1837_s7 + $0x10] sm:$0xff]  }
  0x9e   :  { %692 = vmatpush2.bf16.msra.mxu0 %v1349_v59 }
  0x9f   :  { %693 = vmatprep.subr.bf16.mxu0 %v1354_v60 }
  0xa0   :  { %449 = vmatpush2.bf16.msra.mxu1 %v1312_v33  ;;  %v248_v33 = vld [vmem:[#allocation8] sm:$0x3] }
  0xa1   :  { %450 = vmatprep.subr.bf16.mxu1 %v1313_v34  ;;  %v253_v34 = vrot.slane %v248_v33, %v1695_v2  ;;  %v912_v2 = vld [vmem:[%s1839_s9 + $0x68] sm:$0xff] }
  0xa2   :  { %694 = vmatpush2.bf16.msra.mxu0 %v1352_v61 }
  0xa3   :  { %695 = vmatprep.subr.bf16.mxu0 %v1357_v62 }
  0xa4   :  { %451 = vmatpush2.bf16.msra.mxu1 %v1315_v35  ;;  %v257_v35 = vrot.slane %v248_v33, %v1697_v4  ;;  %v910_v4 = vld [vmem:[%s1839_s9 + $0x58] sm:$0xff] }
  0xa5   :  { %1167 = vmatprep.subr.bf16.mxu1 %v1364_v21  ;;  %v904_v21 = vld [vmem:[%s1839_s9 + $0x28] sm:$0xff] }
  0xa6   :  { %696 = vmatpush2.bf16.msra.mxu0 %v1355_v63  ;;  %v914_v63 = vld [vmem:[%s1839_s9 + $0x78] sm:$0xff] }
  0xa7   :  { %697 = vmatprep.subr.bf16.mxu0 %v1360_v17  ;;  %v908_v17 = vld [vmem:[%s1839_s9 + $0x48] sm:$0xff] }
  0xaa   :  { %698 = vmatpush2.bf16.msra.mxu0 %v1358_v18  ;;  %v907_v18 = vld [vmem:[%s1839_s9 + $0x40] sm:$0xff] }
  0xab   :  { %699 = vmatprep.subr.bf16.mxu0 %v1363_v19  ;;  %v906_v19 = vld [vmem:[%s1839_s9 + $0x38] sm:$0xff] }
  0xae   :  { %700 = vmatpush2.bf16.msra.mxu0 %v1361_v20  ;;  %v905_v20 = vld [vmem:[%s1839_s9 + $0x30] sm:$0xff] }
  0xaf   :  { %1209 = vmatprep.subr.mxu0 %v1587_v0 }
 0x128   :  { %v205_v7 = vpop.f32.mrf.mxu0 }
 0x129   :  { %v206_v8 = vadd.f32 %v205_v7, %v150_v5  ;;  %v909_v5 = vld [vmem:[%s1839_s9 + $0x50] sm:$0xff]  ;;  %v1149_v7 = vld [vmem:[#allocation13] ss:$0 sm:$0xff] }
 0x12a   :  { %v207_v9 = vpop.f32.mrf.mxu0 }
 0x12b   :  { %v208_v10 = vadd.f32 %v207_v9, %v154_v6  ;;  %v212_v11 = vmax.f32 %v206_v8, 0.0 }
 0x12c   :  { %v209_v12 = vpop.f32.mrf.mxu0 }
 0x12d   :  { %v213_v13 = vmax.f32 %v208_v10, 0.0  ;;  %v214_v16 = vpack.c.bf16 %v212_v11, %v212_v11  ;;  %v889_v11 = vld [vmem:[%s1841_s11] sm:$0x3] }
 0x12e   :  { %v210_v14 = vpop.f32.mrf.mxu0 }
 0x12f   :  { %v215_v15 = vpack.c.bf16 %v213_v13, %v213_v13 }
 0x131   :  { %452 = vmatprep.mubr.bf16.mxu1 %v215_v15 }
 0x132   :  { %453 = vmatmul.mubr.bf16.vlgmr.msra.gmra.mxu1 %v214_v16 }
 0x133   :  { %1168 = vmatpush3.bf16.msra.mxu1 %v1365_v22  ;;  %v903_v22 = vld [vmem:[%s1839_s9 + $0x20] sm:$0xff] }
 0x134   :  { %1169 = vmatprep.subr.bf16.mxu1 %v1366_v23  ;;  %v902_v23 = vld [vmem:[%s1839_s9 + $0x18] sm:$0xff] }
 0x137   :  { %1170 = vmatpush3.bf16.msra.mxu1 %v1367_v24  ;;  %v901_v24 = vld [vmem:[%s1839_s9 + $0x10] sm:$0xff] }
 0x138   :  { %1171 = vmatprep.subr.bf16.mxu1 %v1368_v25  ;;  %v900_v25 = vld [vmem:[%s1839_s9 + $0x8] sm:$0xff] }
 0x13b   :  { %1172 = vmatpush3.bf16.msra.mxu1 %v1369_v26  ;;  %v899_v26 = vld [vmem:[%s1839_s9] sm:$0xff]  ;;  %s1589_s9 = smov [#allocation16]  }
 0x13c   :  { %1173 = vmatprep.subr.bf16.mxu1 %v1370_v27  ;;  %s1069_s29 = sshll.u32 %s1589_s9, 4  ;;  %s1070_s29 = int_to_ptr.vmem [resolvable:$true] %s1069_s29 }
 0x13d   :  { %s1544_s30 = scalar_lea.vmem %s1070_s29, 32  ;;  %p1549_p13 = scmp.lt.s32.totalorder %s1070_s29, %s1070_s29 }
 0x13e   :  { %p1545_p12 = scmp.ne.s32.totalorder %s1070_s29, %s1544_s30  ;;  %p1550_p0 = scmp.lt.s32.totalorder %s1544_s30, %s1544_s30 }
 0x13f   :  { %1174 = vmatpush3.bf16.msra.mxu1 %v1371_v28 }
 0x140   :  { %1175 = vmatprep.subr.bf16.mxu1 %v1372_v29  ;;  %p1551_p1 = por %p1550_p0, %p1549_p13 }
 0x142   :  { %p1552_p2 = pnand %p1551_p1, %p1545_p12 }
 0x143   :  { %1176 = vmatpush3.bf16.msra.mxu1 %v1373_v30  ;;  %v986_v30 = vld [vmem:[#allocation14 + $0x8] sm:$0xff] }
 0x144   :  { %1177 = vmatprep.subr.bf16.mxu1 %v1374_v31 }
 0x147   :  { %1178 = vmatpush3.bf16.msra.mxu1 %v1375_v32  ;;  %v985_v32 = vld [vmem:[#allocation14] sm:$0xff] }
 0x148   :  { %1179 = vmatprep.subr.bf16.mxu1 %v1376_v46 }
 0x14b   :  { %1180 = vmatpush3.bf16.msra.mxu1 %v1377_v47 }
 0x14c   :  { %1181 = vmatprep.subr.bf16.mxu1 %v1378_v48 }
 0x14f   :  { %1182 = vmatpush3.bf16.msra.mxu1 %v1379_v49 }
 0x1f2   :  { %v454_v36 = vpop.f32.mrf.mxu1 }
 0x1f3   :  { %v455_v37 = vadd.f32 %v454_v36, %v253_v34 }
 0x1f4   :  { %v456_v38 = vpop.f32.mrf.mxu1 }
 0x1f5   :  { %v457_v39 = vadd.f32 %v456_v38, %v257_v35  ;;  %v461_v40 = vmax.f32 %v455_v37, 0.0 }
 0x1f6   :  { %v458_v41 = vpop.f32.mrf.mxu1 }
 0x1f7   :  { %v462_v42 = vmax.f32 %v457_v39, 0.0  ;;  %v463_v45 = vpack.c.bf16 %v461_v40, %v461_v40 }
 0x1f8   :  { %v459_v43 = vpop.f32.mrf.mxu1 }
 0x1f9   :  { %v464_v44 = vpack.c.bf16 %v462_v42, %v462_v42 }
 0x1fb   :  { %701 = vmatprep.mubr.bf16.mxu0 %v464_v44 }
 0x1fc   :  { %702 = vmatmul.mubr.bf16.vlgmr.msra.gmra.mxu0 %v463_v45 }
 0x1fd   :  { %1210 = vmatpush3.msra.mxu0 %v914_v63  ;;  %1241 = vmatprep.mubr.msk.f32.mxu0 %vm1588_vm2, %v1587_v0 }
 0x1fe   :  { %1211 = vmatprep.subr.mxu0 %v1587_v0 }
 0x1ff   :  { %1212 = vmatpush3.msra.mxu0 %v913_v1 }
 0x200   :  { %1213 = vmatprep.subr.mxu0 %v1587_v0 }
 0x201   :  { %1214 = vmatpush3.msra.mxu0 %v912_v2 }
 0x202   :  { %1215 = vmatprep.subr.mxu0 %v1587_v0 }
 0x203   :  { %1216 = vmatpush3.msra.mxu0 %v911_v3 }
 0x204   :  { %1217 = vmatprep.subr.mxu0 %v1587_v0 }
 0x205   :  { %1218 = vmatpush3.msra.mxu0 %v910_v4 }
 0x206   :  { %1219 = vmatprep.subr.mxu0 %v1587_v0 }
 0x207   :  { %1220 = vmatpush3.msra.mxu0 %v909_v5 }
 0x208   :  { %1221 = vmatprep.subr.mxu0 %v1587_v0 }
 0x209   :  { %1222 = vmatpush3.msra.mxu0 %v908_v17 }
 0x20a   :  { %1223 = vmatprep.subr.mxu0 %v1587_v0 }
 0x20b   :  { %1224 = vmatpush3.msra.mxu0 %v907_v18 }
 0x20c   :  { %1225 = vmatprep.subr.mxu0 %v1587_v0 }
 0x20d   :  { %1226 = vmatpush3.msra.mxu0 %v906_v19 }
 0x20e   :  { %1227 = vmatprep.subr.mxu0 %v1587_v0 }
 0x20f   :  { %1228 = vmatpush3.msra.mxu0 %v905_v20 }
 0x210   :  { %1229 = vmatprep.subr.mxu0 %v1587_v0 }
 0x211   :  { %1230 = vmatpush3.msra.mxu0 %v904_v21 }
 0x212   :  { %1231 = vmatprep.subr.mxu0 %v1587_v0 }
 0x213   :  { %1232 = vmatpush3.msra.mxu0 %v903_v22 }
 0x214   :  { %1233 = vmatprep.subr.mxu0 %v1587_v0 }
 0x215   :  { %1234 = vmatpush3.msra.mxu0 %v902_v23 }
 0x216   :  { %1235 = vmatprep.subr.mxu0 %v1587_v0 }
 0x217   :  { %1236 = vmatpush3.msra.mxu0 %v901_v24 }
 0x218   :  { %1237 = vmatprep.subr.mxu0 %v1587_v0 }
 0x219   :  { %1238 = vmatpush3.msra.mxu0 %v900_v25 }
 0x21a   :  { %1239 = vmatprep.subr.mxu0 %v1587_v0 }
 0x21b   :  { %1240 = vmatpush3.msra.mxu0 %v899_v26 }
 0x21c   :  { %1244 = vmatprep.subr.mxu0 %v1587_v0 }
 0x2bc   :  { %v703_v53 = vpop.f32.mrf.mxu0 }
 0x2bd   :  { %v704_v54 = vadd.f32 %v703_v53, %v502_v51 }
 0x2be   :  { %v705_v55 = vpop.f32.mrf.mxu0 }
 0x2bf   :  { %v706_v56 = vadd.f32 %v705_v55, %v506_v52  ;;  %v710_v57 = vmax.f32 %v704_v54, 0.0 }
 0x2c0   :  { %v707_v58 = vpop.f32.mrf.mxu0 }
 0x2c1   :  { %v711_v59 = vmax.f32 %v706_v56, 0.0  ;;  %v712_v62 = vpack.c.bf16 %v710_v57, %v710_v57 }
 0x2c2   :  { %v708_v60 = vpop.f32.mrf.mxu0 }
 0x2c3   :  { %v713_v61 = vpack.c.bf16 %v711_v59, %v711_v59 }
 0x2c5   :  { %881 = vmatprep.mubr.bf16.mxu1 %v713_v61 }
 0x2c6   :  { %882 = vmatmul.mubr.bf16.vlgmr.msra.gmra.mxu1 %v712_v62 }
 0x386   :  { %v1183_v6 = vpop.f32.mrf.mxu1 }
 0x388   :  { %v1184_v8 = vpop.f32.mrf.mxu1 }
 0x389   :  { %v1185_v9 = vadd.f32 %v1184_v8, %v1183_v6 }
 0x38a   :  { %v1186_v10 = vpop.f32.mrf.mxu1 }
 0x38b   :  { %v884_v12 = vadd.f32 %v1185_v9, %v1149_v7 }
 0x38c   :  { %v1187_v13 = vpop.f32.mrf.mxu1 }
 0x38d   :  { %v890_v14 = vadd.f32 %v889_v11, %v884_v12 }
 0x38f   :  { %v891_v15 = vmul.f32 2.0, %v890_v14 }
 0x391   :  { %v893_v16 = vsel %vm892_vm1, %v891_v15, -inf }
 0x392   :  { %894 = vmax.xlane.f32.xlu0 %v893_v16 }
 0x41b   :  { %v895_v27 = vpop.xlane.xlu0 %894 }
 0x41c   :  { %v896_v28 = vsub.f32 %v891_v15, %v895_v27 }
 0x41e   :  { %v897_v29 = vmul.f32 1.442695, %v896_v28 }
 0x420   :  { %1380 = vpow2.f32 %v897_v29 }
 0x42d   :  { %v1381_v31 = vpop.eup %1380 }
 0x42e   :  { %1242 = vmatmul.mubr.f32.vlgmr.msra.gmra.mxu0 %v1381_v31 }
 0x42f   :  { %1245 = vmatpush3.msra.mxu0 %v986_v30  ;;  %1248 = vmatprep.mubr.msk.f32.mxu0 %vm1588_vm2, %v1587_v0 }
 0x430   :  { %1246 = vmatprep.subr.mxu0 %v1587_v0 }
 0x431   :  { %1247 = vmatpush3.msra.mxu0 %v985_v32 }
 0x4ee   :  { %v981_v33 = vpop.f32.mrf.mxu0 }
 0x4ef   :  { %1249 = vmatmul.mubr.msk.f32.vlgmr.msra.gmra.mxu0 %vm167_vm0, %v981_v33 }
 0x4f0   :  { %v1243_v34 = vpop.f32.mrf.mxu0 }
 0x5af   :  { %v1056_v35 = vpop.f32.mrf.mxu0 }
 0x5b0   :  { %1382 = vrcp.f32 %v1056_v35 }
 0x5b1   :  { %v1250_v36 = vpop.f32.mrf.mxu0 }
 0x5bd   :  { %v1383_v37 = vpop.eup %1382 }
 0x5be   :  { %v1061_v38 = vmul.f32 %v1383_v37, %v1381_v31 }
 0x5c0   :  { %1062 = vst [vmem:[#allocation16] sm:$0x3] %v1061_v38 }
 0x5c1   :  { %1555 = shalt.err (!%p1552_p2)
}
 0x5c2   :  { %1072 = dma.vmem_to_hbm [thread:$0]  %s1070_s29, 32, %s1842_s12, [#allocation4]  }
 0x5c3   :  { %1574 = dma.done.wait [#allocation4], 32  }
 0x5c4   :  { %1575 = vsyncadd [#allocation4], 4294967264 }
 0x5c5   :  { %1076 = vsyncpa [#allocation3], 1 }
 0x5c6   :  { %1077 = vsyncpa [#allocation6], 1 }
 0x5c7   :  { %1078 = vsyncpa [#allocation9], 1 }
 0x5c8   :  { %1079 = vsyncpa [#allocation12], 1 }
 0x5c9   :  { %1080 = vsyncpa [#allocation15], 1 }
 0x5ca   :  { %1081 = vsyncpa [#allocation4], 1 }

</bundles_post_ra>
